<compile_context>
chip_gen: v7x
topology: tpu7x:2x2x1
jax: 0.10.0
libtpu: 0.0.40
codegen_flags: <defaults>
</compile_context>

<pallas_src>
import functools

import jax
import jax.numpy as jnp
from jax.experimental import pallas as pl
from jax.experimental.pallas import tpu as pltpu


# ----------------------------- Pallas kernel --------------------------------
def _patch_embed_matmul_kernel(x_ref, w_ref, b_ref, o_ref):
    # x_ref: (TM, K)      patch-matrix tile (pipelined over the M grid axis)
    # w_ref: (K, D_pad)   projection weight (resident across grid: index_map -> (0,0))
    # b_ref: (1, D_pad)   bias (resident)
    # o_ref: (TM, D_pad)  output tile
    acc = jnp.dot(x_ref[...], w_ref[...], preferred_element_type=jnp.float32)
    o_ref[...] = (acc + b_ref[...]).astype(o_ref.dtype)


def _tile_m_params():
    """(max_tile_rows, vmem_budget_bytes) tuned per TPU generation."""
    kind = ""
    try:
        kind = jax.devices()[0].device_kind.lower()
    except Exception:
        pass
    if "v6" in kind:      # 128 MiB VMEM, 32 MiB scoped default -> big tiles
        return 4096, 24 * (1 << 20)
    if "v5" in kind:      # 16 MiB scoped default -> moderate tiles
        return 1024, 12 * (1 << 20)
    # v7x (64 MiB VMEM / 32 MiB scoped default) and unknown chips: conservative.
    return 2048, 20 * (1 << 20)


def _choose_tile_m(M, K, D_pad, in_itemsize):
    cap, budget = _tile_m_params()
    # Resident operands: weight (K, D_pad) + bias (1, D_pad).
    fixed = K * D_pad * in_itemsize + D_pad * 4
    # Double-buffered per-row bytes: input patch tile + f32 output tile.
    per_row = 2 * (K * in_itemsize + D_pad * 4)
    avail = max(budget - fixed, per_row * 8)
    tm = int(min(avail // per_row, cap))
    tm = min(tm, ((M + 7) // 8) * 8)   # no need to exceed the (rounded) row count
    tm = max(8, (tm // 8) * 8)          # keep sublane-aligned
    return tm


def _patch_embed_gemm(patches, w_t, bias, tile_m):
    M_pad, K = patches.shape
    _, D_pad = w_t.shape
    grid_m = M_pad // tile_m
    cost = pl.CostEstimate(
        flops=2 * M_pad * K * D_pad,
        transcendentals=0,
        bytes_accessed=(patches.size * patches.dtype.itemsize
                        + w_t.size * w_t.dtype.itemsize
                        + bias.size * 4
                        + M_pad * D_pad * 4),
    )
    return pl.pallas_call(
        _patch_embed_matmul_kernel,
        out_shape=jax.ShapeDtypeStruct((M_pad, D_pad), jnp.float32),
        grid_spec=pltpu.PrefetchScalarGridSpec(
            num_scalar_prefetch=0,
            grid=(grid_m,),
            in_specs=[
                pl.BlockSpec((tile_m, K), lambda i: (i, 0)),   # pipelined patch tiles
                pl.BlockSpec((K, D_pad), lambda i: (0, 0)),    # resident weight
                pl.BlockSpec((1, D_pad), lambda i: (0, 0)),    # resident bias
            ],
            out_specs=pl.BlockSpec((tile_m, D_pad), lambda i: (i, 0)),
        ),
        compiler_params=pltpu.CompilerParams(
            dimension_semantics=("parallel",),
        ),
        cost_estimate=cost,
    )(patches, w_t, bias)


# ----------------------------- Forward (jitted) -------------------------------
@functools.partial(jax.jit,
                   static_argnames=("kt", "ph", "pw", "embed_dim", "compute_dtype"))
def _forward(x, weight, bias, *, kt, ph, pw, embed_dim, compute_dtype):
    cdt = jnp.dtype(compute_dtype)
    b, t, c, h, w = x.shape
    tt, nh, nw = t // kt, h // ph, w // pw
    M = b * tt * nh * nw
    K = c * kt * ph * pw
    D = embed_dim
    D_pad = ((D + 127) // 128) * 128

    # Cast the activation stream first so the im2col pass also moves fewer bytes
    # when compute_dtype is bfloat16.
    xs = x.astype(cdt)
    # TODO(synk): fuse this patch-extraction transpose into the kernel
    # (memory_space=pl.ANY + per-tile patch assembly) to drop one full HBM pass.
    xp = xs.reshape(b, tt, kt, c, nh, ph, nw, pw)
    xp = jnp.transpose(xp, (0, 1, 4, 6, 3, 2, 5, 7))  # (b, tt, nh, nw, c, kt, ph, pw)
    patches = xp.reshape(M, K)

    tile_m = _choose_tile_m(M, K, D_pad, cdt.itemsize)
    M_pad = ((M + tile_m - 1) // tile_m) * tile_m
    if M_pad != M:
        patches = jnp.pad(patches, ((0, M_pad - M), (0, 0)))

    # Conv3d weight (D, c, kt, ph, pw) -> (K, D), pad D to a multiple of 128.
    w_t = weight.reshape(D, K).T.astype(cdt)
    b_row = bias.astype(jnp.float32).reshape(1, D)
    if D_pad != D:
        w_t = jnp.pad(w_t, ((0, 0), (0, D_pad - D)))
        b_row = jnp.pad(b_row, ((0, 0), (0, D_pad - D)))

    out = _patch_embed_gemm(patches, w_t, b_row, tile_m)   # (M_pad, D_pad) f32
    out = out[:M, :D]
    # == rearrange 'b c t h w -> b t (h w) c'
    return out.reshape(b, tt, nh * nw, D).astype(x.dtype)


# ----------------------------- Module wrapper --------------------------------
class PatchEmbedVideoMambaPallas:
    """Image-to-patch embedding (VideoMamba style) with a Pallas GEMM hot path."""

    def __init__(self, img_size=224, patch_size=16, kernel_size=1, in_chans=3,
                 embed_dim=768, key=None):
        self.img_size = (img_size, img_size)
        self.patch_size = (patch_size, patch_size)
        self.num_patches = (img_size // patch_size) * (img_size // patch_size)
        self.tubelet_size = kernel_size
        self.in_chans = in_chans
        self.embed_dim = embed_dim

        if key is None:
            key = jax.random.PRNGKey(0)
        k_w, k_b = jax.random.split(key)
        # Conv3d weight: (embed_dim, in_chans, kt, ph, pw); bias: (embed_dim,)
        self.weight = 0.02 * jax.random.normal(
            k_w, (embed_dim, in_chans, kernel_size, patch_size, patch_size),
            dtype=jnp.float32)
        self.bias = 0.02 * jax.random.normal(k_b, (embed_dim,), dtype=jnp.float32)

    def __call__(self, x, compute_dtype="float32"):
        # x: (b, t, c, h, w)
        b, t, c, h, w = x.shape
        kt = self.tubelet_size
        ph, pw = self.patch_size
        assert c == self.in_chans
        assert t % kt == 0 and h % ph == 0 and w % pw == 0
        return _forward(x, self.weight, self.bias, kt=kt, ph=ph, pw=pw,
                        embed_dim=self.embed_dim,
                        compute_dtype=jnp.dtype(compute_dtype).name)


# ----------------------------- Reference (pure JAX) ---------------------------
def _reference_forward(module, x):
    xc = jnp.transpose(x, (0, 2, 1, 3, 4))  # b c t h w
    out = jax.lax.conv_general_dilated(
        xc, module.weight,
        window_strides=(module.tubelet_size,) + module.patch_size,
        padding="VALID",
        dimension_numbers=("NCDHW", "OIDHW", "NCDHW"),
    )
    out = out + module.bias.reshape(1, -1, 1, 1, 1)
    b, d, tt, nh, nw = out.shape
    return jnp.transpose(out, (0, 2, 3, 4, 1)).reshape(b, tt, nh * nw, d)


# ----------------------------------- Main -------------------------------------
if __name__ == "__main__":
    key = jax.random.PRNGKey(0)
    k_param, k_x = jax.random.split(key)

    # Small, forward-consistent shapes: batch=2, frames=2, channels=3,
    # spatial 16x16, patch 4x4, tubelet 1, embed_dim=32.
    module = PatchEmbedVideoMambaPallas(
        img_size=16, patch_size=4, kernel_size=1, in_chans=3, embed_dim=32,
        key=k_param)

    x = jax.random.normal(k_x, (2, 2, 3, 16, 16), dtype=jnp.float32)

    ref = _reference_forward(module, x)

    # f32 streaming path (bit-for-bit comparable with the reference).
    out = module(x)
    out = jax.block_until_ready(out)
    assert out.shape == (2, 2, 16, 32), out.shape
    assert jnp.allclose(out, ref, atol=1e-4, rtol=1e-4), "f32 mismatch vs reference"

    # bf16 streaming path (v6e/v7x feedback): halves HBM bytes, f32 accumulation.
    out_bf16 = module(x, compute_dtype="bfloat16")
    out_bf16 = jax.block_until_ready(out_bf16)
    assert out_bf16.shape == (2, 2, 16, 32), out_bf16.shape
    assert jnp.allclose(out_bf16, ref, atol=5e-2, rtol=5e-2), "bf16 mismatch vs reference"

    print("KERNEL_OK")
</pallas_src>

<mosaic_0001>
module attributes {stable_mosaic.version = 11 : i64} {
  func.func @_patch_embed_matmul_kernel(%arg0: i32, %arg1: memref<64x48xf32, #tpu.memory_space<vmem>>, %arg2: memref<48x128xf32, #tpu.memory_space<vmem>>, %arg3: memref<1x128xf32, #tpu.memory_space<vmem>>, %arg4: memref<64x128xf32, #tpu.memory_space<vmem>>) attributes {dimension_semantics = [#tpu.dimension_semantics<parallel>], iteration_bounds = array<i64: 1>, scalar_prefetch = 0 : i64, scratch_operands = 0 : i64, tpu.core_type = #tpu.core_type<tc>, window_params = [{transform_indices = @transform_0, window_bounds = array<i64: 64, 48>}, {pipeline_mode = #tpu.pipeline_mode<synchronous>, transform_indices = @transform_1, window_bounds = array<i64: 48, 128>}, {pipeline_mode = #tpu.pipeline_mode<synchronous>, transform_indices = @transform_2, window_bounds = array<i64: 1, 128>}, {transform_indices = @transform_3, window_bounds = array<i64: 64, 128>}]} {
    %c0 = arith.constant 0 : index
    %c0_0 = arith.constant 0 : index
    %0 = vector.load %arg1[%c0, %c0_0] : memref<64x48xf32, #tpu.memory_space<vmem>>, vector<64x48xf32>
    %c0_1 = arith.constant 0 : index
    %c0_2 = arith.constant 0 : index
    %1 = vector.load %arg2[%c0_1, %c0_2] : memref<48x128xf32, #tpu.memory_space<vmem>>, vector<48x128xf32>
    %cst = arith.constant dense<0.000000e+00> : vector<64x128xf32>
    %2 = tpu.matmul %0, %1, %cst {dimension_numbers = #tpu.dot_dimension_numbers<[1], [0], [0], [1], [0, 0, 1, 1], [], []>} : vector<64x48xf32>, vector<48x128xf32>, vector<64x128xf32> -> vector<64x128xf32>
    %c0_3 = arith.constant 0 : index
    %c0_4 = arith.constant 0 : index
    %3 = vector.load %arg3[%c0_3, %c0_4] : memref<1x128xf32, #tpu.memory_space<vmem>>, vector<1x128xf32>
    %4 = vector.broadcast %3 : vector<1x128xf32> to vector<64x128xf32>
    %5 = arith.addf %2, %4 : vector<64x128xf32>
    %c0_5 = arith.constant 0 : index
    %c0_6 = arith.constant 0 : index
    %6 = vector.load %arg4[%c0_5, %c0_6] : memref<64x128xf32, #tpu.memory_space<vmem>>, vector<64x128xf32>
    tpu.vector_store %arg4[%c0_5, %c0_6], %5 {strides = array<i32>} : memref<64x128xf32, #tpu.memory_space<vmem>>, vector<64x128xf32>,
    return
  }
  func.func @transform_0(%arg0: i32) -> (i32, i32) {
    %c0_i32 = arith.constant 0 : i32
    %c0_i32_0 = arith.constant 0 : i32
    return %arg0, %c0_i32 : i32, i32
  }
  func.func @transform_1(%arg0: i32) -> (i32, i32) {
    %c0_i32 = arith.constant 0 : i32
    %c0_i32_0 = arith.constant 0 : i32
    %c0_i32_1 = arith.constant 0 : i32
    return %c0_i32, %c0_i32_0 : i32, i32
  }
  func.func @transform_2(%arg0: i32) -> (i32, i32) {
    %c0_i32 = arith.constant 0 : i32
    %c0_i32_0 = arith.constant 0 : i32
    %c0_i32_1 = arith.constant 0 : i32
    return %c0_i32, %c0_i32_0 : i32, i32
  }
  func.func @transform_3(%arg0: i32) -> (i32, i32) {
    %c0_i32 = arith.constant 0 : i32
    %c0_i32_0 = arith.constant 0 : i32
    return %arg0, %c0_i32 : i32, i32
  }
}

</mosaic_0001>

<bundles_post_ra>
// kernel: _forward.1
= control target key start
LH: loop header
LB: loop body
LE: loop exit
PB: predicated region body
PF: predicated region fallthrough
CT: control target
= control target key end

     0   :  { %vm36_vm0 = vcmask 392192   ;;  %s370_s0 = inlined_call_operand.vmem [shape: f32[64,48], index: 0, kind: input, shape index: {}]   ;;  %s371_s1 = inlined_call_operand.vmem [shape: f32[48,128], index: 1, kind: input, shape index: {}]   ;;  %s372_s2 = inlined_call_operand.vmem [shape: f32[1,128], index: 2, kind: input, shape index: {}]   ;;  %s373_s3 = inlined_call_operand.hbm [shape: f32[64,128], index: 3, kind: output, shape index: {}]  }
   0x1   :  { %v23_v0 = vld [vmem:[%s371_s1] sm:$0xff]  ;;  %v24_v1 = vld [vmem:[%s371_s1 + $0x8] sm:$0xff]  ;;  %v25_v2 = vld [vmem:[%s371_s1 + $0x10] sm:$0xff] }
   0x2   :  { %v237_v3 = vpack.c.bf16 %v24_v1, %v23_v0  ;;  %v26_v4 = vld [vmem:[%s371_s1 + $0x18] sm:$0xff]  ;;  %v27_v6 = vld [vmem:[%s371_s1 + $0x20] sm:$0xff]  ;;  %v28_v7 = vld [vmem:[%s371_s1 + $0x28] sm:$0xff] }
   0x3   :  { %v241_v5 = vpack.c.bf16 %v26_v4, %v25_v2  ;;  %v15_v8 = vld [vmem:[%s370_s0] sm:$0xff] }
   0x4   :  { %238 = vmatprep.subr.bf16.mxu0 %v237_v3  ;;  %249 = vmatprep.subr.bf16.mxu1 %v237_v3  ;;  %v19_v9 = vld [vmem:[%s370_s0 + $0x20] sm:$0xff] }
   0x5   :  { %240 = vmatpush3.bf16.msra.mxu0 %v237_v3  ;;  %252 = vmatpush3.bf16.msra.mxu1 %v237_v3 }
   0x6   :  { %8 = vsyncpa [#allocation3], 0  ;;  %242 = vmatprep.subr.bf16.mxu0 %v241_v5  ;;  %250 = vmatprep.subr.bf16.mxu1 %v241_v5  ;;  %v245_v10 = vpack.c.bf16 %v28_v7, %v27_v6  ;;  %v16_v11 = vld [vmem:[%s370_s0 + $0x8] sm:$0xff]  ;;  %v17_v13 = vld [vmem:[%s370_s0 + $0x10] sm:$0xff]  ;;  %s282_s14 = smov [#allocation2]  }
   0x7   :  { %225 = vmatprep.mubr.msk.f32.mxu0 %vm36_vm0, %v15_v8  ;;  %231 = vmatprep.mubr.msk.f32.mxu1 %vm36_vm0, %v19_v9  ;;  %v20_v12 = vld [vmem:[%s370_s0 + $0x28] sm:$0xff]  ;;  %v21_v14 = vld [vmem:[%s370_s0 + $0x30] sm:$0xff]  ;;  %v18_v15 = vld [vmem:[%s370_s0 + $0x18] sm:$0xff]  ;;  %s179_s15 = sshll.u32 %s282_s14, 4  ;;  %s180_s15 = int_to_ptr.vmem [resolvable:$true] %s179_s15 }
   0x8   :  { %v22_v16 = vld [vmem:[%s370_s0 + $0x38] sm:$0xff]  ;;  %v190_v17 = vld [vmem:[%s372_s2] ss:$0 sm:$0xff]  ;;  %s258_s0 = scalar_lea.vmem %s180_s15, 1024  ;;  %p263_p1 = scmp.lt.s32.totalorder %s180_s15, %s180_s15 }
   0x9   :  { %244 = vmatpush3.bf16.msra.mxu0 %v241_v5  ;;  %253 = vmatpush3.bf16.msra.mxu1 %v241_v5  ;;  %p259_p0 = scmp.ne.s32.totalorder %s180_s15, %s258_s0  ;;  %p264_p2 = scmp.lt.s32.totalorder %s258_s0, %s258_s0 }
   0xa   :  { %246 = vmatprep.subr.bf16.mxu0 %v245_v10  ;;  %251 = vmatprep.subr.bf16.mxu1 %v245_v10 }
   0xb   :  { %p265_p3 = por %p264_p2, %p263_p1 }
   0xd   :  { %248 = vmatpush3.bf16.msra.mxu0 %v245_v10  ;;  %254 = vmatpush3.bf16.msra.mxu1 %v245_v10  ;;  %p266_p4 = pnand %p265_p3, %p259_p0 }
  0x10   :  { %226 = vmatmul.mubr.msk.f32.vlgmr.msra.gmra.mrb[0].mxu0 %vm36_vm0, %v16_v11  ;;  %232 = vmatmul.mubr.msk.f32.vlgmr.msra.gmra.mrb[0].mxu1 %vm36_vm0, %v20_v12 }
  0x11   :  { %228 = vmatprep.mubr.msk.f32.mxu0 %vm36_vm0, %v17_v13  ;;  %234 = vmatprep.mubr.msk.f32.mxu1 %vm36_vm0, %v21_v14 }
  0x14   :  { %229 = vmatmul.mubr.msk.f32.gmra.mrb[2].mxu0 %vm36_vm0, %v18_v15  ;;  %235 = vmatmul.mubr.msk.f32.gmra.mrb[2].mxu1 %vm36_vm0, %v22_v16 }
  0xe3   :  { %v227_v18 = vpop.f32.mrb[0].mxu0  ;;  %v233_v19 = vpop.f32.mrb[0].mxu1 }
  0xe4   :  { %v133_v20 = vadd.f32 %v227_v18, %v190_v17  ;;  %v153_v21 = vadd.f32 %v233_v19, %v190_v17  ;;  %v127_v22 = vpop.f32.mrb[1].mxu0  ;;  %v147_v23 = vpop.f32.mrb[1].mxu1 }
  0xe5   :  { %v128_v24 = vadd.f32 %v190_v17, %v127_v22  ;;  %v148_v25 = vadd.f32 %v190_v17, %v147_v23 }
  0xe6   :  { %167 = vst [vmem:[#allocation2 + $0x8] sm:$0xff] %v133_v20  ;;  %171 = vst [vmem:[#allocation2 + $0x28] sm:$0xff] %v153_v21 }
  0xe7   :  { %166 = vst [vmem:[#allocation2] sm:$0xff] %v128_v24  ;;  %170 = vst [vmem:[#allocation2 + $0x20] sm:$0xff] %v148_v25  ;;  %v230_v26 = vpop.f32.mrb[2].mxu0  ;;  %v236_v27 = vpop.f32.mrb[2].mxu1 }
  0xe8   :  { %v143_v28 = vadd.f32 %v230_v26, %v190_v17  ;;  %v163_v29 = vadd.f32 %v236_v27, %v190_v17  ;;  %v137_v30 = vpop.f32.mrb[3].mxu0  ;;  %v157_v31 = vpop.f32.mrb[3].mxu1 }
  0xe9   :  { %v138_v32 = vadd.f32 %v190_v17, %v137_v30  ;;  %v158_v33 = vadd.f32 %v190_v17, %v157_v31 }
  0xea   :  { %169 = vst [vmem:[#allocation2 + $0x18] sm:$0xff] %v143_v28  ;;  %173 = vst [vmem:[#allocation2 + $0x38] sm:$0xff] %v163_v29 }
  0xeb   :  { %168 = vst [vmem:[#allocation2 + $0x10] sm:$0xff] %v138_v32  ;;  %172 = vst [vmem:[#allocation2 + $0x30] sm:$0xff] %v158_v33 }
  0xec   :  { %269 = shalt.err (!%p266_p4)
}
  0xed   :  { %s270_s17 = scalar_lea.hbm %s373_s3, 1024 }
  0xee   :  { %p271_p5 = scmp.ne.s32.totalorder %s373_s3, %s270_s17  ;;  %p274_p6 = scmp.lt.u32.totalorder %s270_s17, %s373_s3 }
  0xf0   :  { %p276_p7 = pnand %p274_p6, %p271_p5 }
  0xf2   :  { %279 = shalt.err (!%p276_p7)
}
  0xf3   :  { %s283_s22 = smov 128   ;;  %s284_s23 = smov 8  }
  0xf4   :  { %185 = dma.vmem_to_hbm [thread:$0]  %s180_s15, 1024, %s373_s3, [#allocation3], %s283_s22, %s283_s22, %s284_s23  }
  0xf5   :  { %280 = dma.done.wait [#allocation3], 1024  }
  0xf6   :  { %281 = vsyncadd [#allocation3], 4294966272 }
  0xf7   :  { %189 = vsyncpa [#allocation3], 1 }

</bundles_post_ra>
